<compile_context>
chip_gen: v7x
topology: tpu7x:2x2x1
jax: 0.10.0
libtpu: 0.0.40
codegen_flags: <defaults>
</compile_context>

<pallas_src>
import functools

import jax
import jax.numpy as jnp
from jax.experimental import pallas as pl
from jax.experimental.pallas import tpu as pltpu

_LANE = 128


# --------------------------------------------------------------------------- #
# Pass 1: pooled mean over time -> 1x1 conv -> channel softmax   (tiny work)
# --------------------------------------------------------------------------- #
def _attn_kernel(x_ref, w1t_ref, b1_ref, attn_ref, sum_ref, *, inv_t):
    # x_ref   : [1, C_in, tT]  block of (zero-padded) input
    # w1t_ref : [C_in, C_in]   = W1^T
    # b1_ref  : [1, C_in]
    # attn_ref: [1, 1, C_in]   softmax over channels (written at last T tile)
    # sum_ref : [C_in, 1] f32  running per-channel sum over time (scratch)
    t = pl.program_id(1)

    @pl.when(t == 0)
    def _():
        sum_ref[...] = jnp.zeros_like(sum_ref)

    xt = x_ref[0].astype(jnp.float32)                      # f32 accumulation
    sum_ref[...] += jnp.sum(xt, axis=-1, keepdims=True)    # [C_in, 1]

    @pl.when(t == pl.num_programs(1) - 1)
    def _():
        pooled = sum_ref[...] * inv_t                      # mean over the *true* T
        # z[o] = sum_i W1[o, i] * pooled[i]  -- row-oriented so the softmax is a
        # cheap lane reduction and the result lands directly in [1, C_in].
        z = jnp.sum(w1t_ref[...] * pooled, axis=0, keepdims=True) + b1_ref[...]
        z = z - jnp.max(z, axis=-1, keepdims=True)
        e = jnp.exp(z)
        # This runs once per batch (finalize step, off the hot loop), so the
        # exact reciprocal costs nothing and keeps parity with PyTorch softmax.
        attn = e * pl.reciprocal(jnp.sum(e, axis=-1, keepdims=True), approx=False)
        attn_ref[0] = attn.astype(attn_ref.dtype)          # [1, C_in]


# --------------------------------------------------------------------------- #
# Pass 2: y = (W2 * attn^T) @ x + b2       (the heavy, T-tiled MXU matmul)
# --------------------------------------------------------------------------- #
def _bhead_matmul_kernel(x_ref, attn_ref, w2_ref, b2_ref, o_ref):
    # x_ref   : [1, C_in, tT]   (f32 or bf16)
    # attn_ref: [1, 1, C_in]    f32
    # w2_ref  : [C_out, C_in]   f32
    # b2_ref  : [C_out, 1]      f32
    # o_ref   : [1, C_out, tT]
    # Fold attention into the small weight:  W2 @ diag(attn) @ x == (W2*attn^T) @ x
    w2s = w2_ref[...] * attn_ref[0]                        # [C_out, C_in], f32
    w2s = w2s.astype(x_ref.dtype)                          # bf16 or f32 MXU operands
    y = jnp.dot(w2s, x_ref[0], preferred_element_type=jnp.float32)  # f32 accumulate
    o_ref[0] = (y + b2_ref[...]).astype(o_ref.dtype)


def _pick_tile_t(t_padded, cap=2048):
    """Largest multiple of 128 that divides t_padded, capped (keeps blocks in VMEM)."""
    for cand in range(min(cap, t_padded), _LANE - 1, -_LANE):
        if t_padded % cand == 0:
            return cand
    return _LANE


def bhead_forward(x, w1, b1, w2, b2, *, compute_dtype=None, tile_t_cap=2048):
    """BHead forward. x: [B, C_in, T] -> [B, C_out, T].

    w1: [C_in, C_in], b1: [C_in] or [C_in, 1]    (SpatialAttention 1x1 conv)
    w2: [C_out, C_in], b2: [C_out] or [C_out, 1] (output 1x1 conv)
    compute_dtype: dtype of the heavy matmul operands (e.g. jnp.bfloat16);
                   None -> keep x.dtype. Accumulation is always f32.
    """
    B, C_in, T = x.shape
    C_out = w2.shape[0]
    out_dtype = x.dtype

    w1t = jnp.asarray(w1, jnp.float32).T                   # [C_in, C_in]
    b1r = jnp.asarray(b1, jnp.float32).reshape(1, C_in)    # row
    w2f = jnp.asarray(w2, jnp.float32)                     # [C_out, C_in]
    b2c = jnp.asarray(b2, jnp.float32).reshape(C_out, 1)   # column

    # Pad T to a lane-dense multiple of 128: unmasked vector stores. Zero padding
    # does not change the mean (we divide by the true T) and padded output
    # columns are sliced off at the end.
    Tp = ((T + _LANE - 1) // _LANE) * _LANE
    xc = x if compute_dtype is None else x.astype(compute_dtype)
    if Tp != T:
        xc = jnp.pad(xc, ((0, 0), (0, 0), (0, Tp - T)))
    tT = _pick_tile_t(Tp, tile_t_cap)
    nT = Tp // tT
    bytes_x = int(xc.size) * xc.dtype.itemsize
    # NOTE: for very small C_in (< 8 sublanes) one could process several batches
    # per grid step to improve vreg occupancy; omitted for clarity (HBM-bound).

    # ---- pass 1: per-batch channel attention -------------------------------
    attn = pl.pallas_call(
        functools.partial(_attn_kernel, inv_t=1.0 / T),
        out_shape=jax.ShapeDtypeStruct((B, 1, C_in), jnp.float32),
        grid_spec=pltpu.PrefetchScalarGridSpec(
            num_scalar_prefetch=0,
            grid=(B, nT),                                  # reduction axis (T) last
            in_specs=[
                pl.BlockSpec((1, C_in, tT), lambda b, t: (b, 0, t)),
                # constant-index weight blocks (pl.Buffered(1) could drop their
                # second pipeline buffer; omitted for portability)
                pl.BlockSpec((C_in, C_in), lambda b, t: (0, 0)),
                pl.BlockSpec((1, C_in), lambda b, t: (0, 0)),
            ],
            out_specs=pl.BlockSpec((1, 1, C_in), lambda b, t: (b, 0, 0)),
            scratch_shapes=[pltpu.VMEM((C_in, 1), jnp.float32)],
        ),
        compiler_params=pltpu.CompilerParams(
            dimension_semantics=("parallel", "arbitrary")),
        cost_estimate=pl.CostEstimate(
            flops=int(B * C_in * Tp + 2 * B * C_in * C_in),
            transcendentals=int(B * C_in),
            bytes_accessed=int(bytes_x + w1t.size * 4 + b1r.size * 4 + B * C_in * 4),
        ),
    )(xc, w1t, b1r)

    # ---- pass 2: y = (W2 * attn) @ x + b2, tiled over (B, T) ---------------
    y = pl.pallas_call(
        _bhead_matmul_kernel,
        out_shape=jax.ShapeDtypeStruct((B, C_out, Tp), out_dtype),
        grid_spec=pltpu.PrefetchScalarGridSpec(
            num_scalar_prefetch=0,
            grid=(B, nT),
            in_specs=[
                pl.BlockSpec((1, C_in, tT), lambda b, t: (b, 0, t)),
                pl.BlockSpec((1, 1, C_in), lambda b, t: (b, 0, 0)),
                pl.BlockSpec((C_out, C_in), lambda b, t: (0, 0)),
                pl.BlockSpec((C_out, 1), lambda b, t: (0, 0)),
            ],
            out_specs=pl.BlockSpec((1, C_out, tT), lambda b, t: (b, 0, t)),
        ),
        compiler_params=pltpu.CompilerParams(
            dimension_semantics=("parallel", "parallel")),
        cost_estimate=pl.CostEstimate(
            flops=int(2 * B * C_out * C_in * Tp + B * C_out * Tp),
            transcendentals=0,
            bytes_accessed=int(bytes_x + B * C_in * 4 + w2f.size * 4 + b2c.size * 4
                               + B * C_out * Tp * jnp.dtype(out_dtype).itemsize),
        ),
    )(xc, attn, w2f, b2c)

    return y[:, :, :T] if Tp != T else y


def bhead_reference(x, w1, b1, w2, b2):
    """Plain-JAX reference matching the PyTorch forward."""
    pooled = jnp.mean(x, axis=-1, keepdims=True)                 # [B, C_in, 1]
    a = jnp.einsum("oi,bit->bot", w1, pooled) + b1[None]         # [B, C_in, 1]
    attn = jax.nn.softmax(a, axis=1)
    x_att = x * attn
    y = jnp.einsum("oi,bit->bot", w2, x_att) + b2[None]          # [B, C_out, T]
    return y


def init_params(key, n_chs_in, n_chs_out, dtype=jnp.float32):
    """Deterministic init mimicking PyTorch Conv1d default (U(-1/sqrt(fan_in), +))."""
    k1, k2, k3, k4 = jax.random.split(key, 4)
    bound_sa = 1.0 / jnp.sqrt(jnp.asarray(n_chs_in, dtype))
    bound_out = 1.0 / jnp.sqrt(jnp.asarray(n_chs_in, dtype))
    w1 = jax.random.uniform(k1, (n_chs_in, n_chs_in), dtype, -bound_sa, bound_sa)
    b1 = jax.random.uniform(k2, (n_chs_in, 1), dtype, -bound_sa, bound_sa)
    w2 = jax.random.uniform(k3, (n_chs_out, n_chs_in), dtype, -bound_out, bound_out)
    b2 = jax.random.uniform(k4, (n_chs_out, 1), dtype, -bound_out, bound_out)
    return w1, b1, w2, b2


if __name__ == "__main__":
    key = jax.random.PRNGKey(0)
    kx, kp = jax.random.split(key)

    B, C_in, C_out, T = 2, 4, 8, 16
    x = jax.random.normal(kx, (B, C_in, T), jnp.float32)
    w1, b1, w2, b2 = init_params(kp, C_in, C_out)

    y_ref = bhead_reference(x, w1, b1, w2, b2)

    # f32 MXU operand path: strict check against the plain-JAX reference.
    y = jax.block_until_ready(bhead_forward(x, w1, b1, w2, b2))
    assert y.shape == (B, C_out, T)
    assert jnp.allclose(y, y_ref, atol=1e-5, rtol=1e-5), "f32 mismatch vs reference"

    # bf16 MXU operand path (f32 accumulation): looser tolerance.
    y_bf16 = jax.block_until_ready(
        bhead_forward(x, w1, b1, w2, b2, compute_dtype=jnp.bfloat16))
    assert y_bf16.shape == (B, C_out, T)
    assert jnp.allclose(y_bf16, y_ref, atol=5e-2, rtol=5e-2), "bf16 mismatch vs reference"

    print("KERNEL_OK")
</pallas_src>

<mosaic_0001>
module attributes {stable_mosaic.version = 11 : i64} {
  func.func @_attn_kernel(%arg0: i32, %arg1: i32, %arg2: memref<1x4x128xf32, #tpu.memory_space<vmem>>, %arg3: memref<4x4xf32, #tpu.memory_space<vmem>>, %arg4: memref<1x4xf32, #tpu.memory_space<vmem>>, %arg5: memref<1x1x4xf32, #tpu.memory_space<vmem>>, %arg6: memref<4x1xf32, #tpu.memory_space<vmem>>) attributes {dimension_semantics = [#tpu.dimension_semantics<parallel>, #tpu.dimension_semantics<arbitrary>], iteration_bounds = array<i64: 2, 1>, scalar_prefetch = 0 : i64, scratch_operands = 1 : i64, tpu.core_type = #tpu.core_type<tc>, window_params = [{transform_indices = @transform_0, window_bounds = array<i64: 1, 4, 128>}, {pipeline_mode = #tpu.pipeline_mode<synchronous>, transform_indices = @transform_1, window_bounds = array<i64: 4, 4>}, {pipeline_mode = #tpu.pipeline_mode<synchronous>, transform_indices = @transform_2, window_bounds = array<i64: 1, 4>}, {transform_indices = @transform_3, window_bounds = array<i64: 1, 1, 4>}]} {
    %c0_i32 = arith.constant 0 : i32
    %0 = arith.cmpi eq, %arg1, %c0_i32 : i32
    %1 = arith.extui %0 : i1 to i32
    %c0_i32_0 = arith.constant 0 : i32
    %2 = arith.cmpi ne, %1, %c0_i32_0 : i32
    scf.if %2 {
      %cst_9 = arith.constant 0.000000e+00 : f32
      %13 = vector.broadcast %cst_9 : f32 to vector<4x1xf32>
      %c0_10 = arith.constant 0 : index
      %c0_11 = arith.constant 0 : index
      %14 = vector.load %arg6[%c0_10, %c0_11] : memref<4x1xf32, #tpu.memory_space<vmem>>, vector<4x1xf32>
      tpu.vector_store %arg6[%c0_10, %c0_11], %13 {strides = array<i32>} : memref<4x1xf32, #tpu.memory_space<vmem>>, vector<4x1xf32>,
    } else {
    }
    %c0 = arith.constant 0 : index
    %c0_1 = arith.constant 0 : index
    %c0_2 = arith.constant 0 : index
    %3 = vector.load %arg2[%c0, %c0_1, %c0_2] : memref<1x4x128xf32, #tpu.memory_space<vmem>>, vector<1x4x128xf32>
    %4 = vector.shape_cast %3 : vector<1x4x128xf32> to vector<4x128xf32>
    %c0_3 = arith.constant 0 : index
    %c0_4 = arith.constant 0 : index
    %5 = vector.load %arg6[%c0_3, %c0_4] : memref<4x1xf32, #tpu.memory_space<vmem>>, vector<4x1xf32>
    %cst = arith.constant dense<0.000000e+00> : vector<4xf32>
    %6 = vector.multi_reduction <add>, %4, %cst [1] : vector<4x128xf32> to vector<4xf32>
    %7 = vector.shape_cast %6 : vector<4xf32> to vector<4x1xf32>
    %8 = arith.addf %5, %7 : vector<4x1xf32>
    %c0_5 = arith.constant 0 : index
    %c0_6 = arith.constant 0 : index
    %9 = vector.load %arg6[%c0_5, %c0_6] : memref<4x1xf32, #tpu.memory_space<vmem>>, vector<4x1xf32>
    tpu.vector_store %arg6[%c0_5, %c0_6], %8 {strides = array<i32>} : memref<4x1xf32, #tpu.memory_space<vmem>>, vector<4x1xf32>,
    %c0_i32_7 = arith.constant 0 : i32
    %10 = arith.cmpi eq, %arg1, %c0_i32_7 : i32
    %11 = arith.extui %10 : i1 to i32
    %c0_i32_8 = arith.constant 0 : i32
    %12 = arith.cmpi ne, %11, %c0_i32_8 : i32
    scf.if %12 {
      %c0_9 = arith.constant 0 : index
      %c0_10 = arith.constant 0 : index
      %13 = vector.load %arg6[%c0_9, %c0_10] : memref<4x1xf32, #tpu.memory_space<vmem>>, vector<4x1xf32>
      %cst_11 = arith.constant 6.250000e-02 : f32
      %14 = vector.broadcast %cst_11 : f32 to vector<4x1xf32>
      %15 = arith.mulf %13, %14 : vector<4x1xf32>
      %c0_12 = arith.constant 0 : index
      %c0_13 = arith.constant 0 : index
      %16 = vector.load %arg3[%c0_12, %c0_13] : memref<4x4xf32, #tpu.memory_space<vmem>>, vector<4x4xf32>
      %17 = vector.broadcast %15 : vector<4x1xf32> to vector<4x4xf32>
      %18 = arith.mulf %16, %17 : vector<4x4xf32>
      %cst_14 = arith.constant dense<0.000000e+00> : vector<4xf32>
      %19 = vector.multi_reduction <add>, %18, %cst_14 [0] : vector<4x4xf32> to vector<4xf32>
      %20 = vector.shape_cast %19 : vector<4xf32> to vector<1x4xf32>
      %c0_15 = arith.constant 0 : index
      %c0_16 = arith.constant 0 : index
      %21 = vector.load %arg4[%c0_15, %c0_16] : memref<1x4xf32, #tpu.memory_space<vmem>>, vector<1x4xf32>
      %22 = arith.addf %20, %21 : vector<1x4xf32>
      %cst_17 = arith.constant dense<0xFF800000> : vector<1xf32>
      %23 = vector.multi_reduction <maximumf>, %22, %cst_17 [1] : vector<1x4xf32> to vector<1xf32>
      %24 = vector.shape_cast %23 : vector<1xf32> to vector<1x1xf32>
      %25 = vector.broadcast %24 : vector<1x1xf32> to vector<1x4xf32>
      %26 = arith.subf %22, %25 : vector<1x4xf32>
      %27 = math.exp %26 : vector<1x4xf32>
      %cst_18 = arith.constant dense<0.000000e+00> : vector<1xf32>
      %28 = vector.multi_reduction <add>, %27, %cst_18 [1] : vector<1x4xf32> to vector<1xf32>
      %29 = vector.shape_cast %28 : vector<1xf32> to vector<1x1xf32>
      %30 = tpu.reciprocal %29 : vector<1x1xf32> -> vector<1x1xf32>
      %31 = vector.broadcast %30 : vector<1x1xf32> to vector<1x4xf32>
      %32 = arith.mulf %27, %31 : vector<1x4xf32>
      %c0_19 = arith.constant 0 : index
      %c0_20 = arith.constant 0 : index
      %c0_21 = arith.constant 0 : index
      %33 = vector.load %arg5[%c0_19, %c0_20, %c0_21] : memref<1x1x4xf32, #tpu.memory_space<vmem>>, vector<1x1x4xf32>
      %34 = vector.shape_cast %33 : vector<1x1x4xf32> to vector<1x4xf32>
      %35 = vector.shape_cast %32 : vector<1x4xf32> to vector<1x1x4xf32>
      tpu.vector_store %arg5[%c0_19, %c0_20, %c0_21], %35 {strides = array<i32>} : memref<1x1x4xf32, #tpu.memory_space<vmem>>, vector<1x1x4xf32>,
    } else {
    }
    return
  }
  func.func @transform_0(%arg0: i32, %arg1: i32) -> (i32, i32, i32) {
    %c0_i32 = arith.constant 0 : i32
    %c0_i32_0 = arith.constant 0 : i32
    return %arg0, %c0_i32, %arg1 : i32, i32, i32
  }
  func.func @transform_1(%arg0: i32, %arg1: i32) -> (i32, i32) {
    %c0_i32 = arith.constant 0 : i32
    %c0_i32_0 = arith.constant 0 : i32
    %c0_i32_1 = arith.constant 0 : i32
    return %c0_i32, %c0_i32_0 : i32, i32
  }
  func.func @transform_2(%arg0: i32, %arg1: i32) -> (i32, i32) {
    %c0_i32 = arith.constant 0 : i32
    %c0_i32_0 = arith.constant 0 : i32
    %c0_i32_1 = arith.constant 0 : i32
    return %c0_i32, %c0_i32_0 : i32, i32
  }
  func.func @transform_3(%arg0: i32, %arg1: i32) -> (i32, i32, i32) {
    %c0_i32 = arith.constant 0 : i32
    %c0_i32_0 = arith.constant 0 : i32
    %c0_i32_1 = arith.constant 0 : i32
    return %arg0, %c0_i32, %c0_i32_0 : i32, i32, i32
  }
}

</mosaic_0001>

<bundles_post_ra>
// kernel: tpu_custom_call.1
= control target key start
LH: loop header
LB: loop body
LE: loop exit
PB: predicated region body
PF: predicated region fallthrough
CT: control target
= control target key end

     0   :  { %8 = vsyncpa [#allocation4], 0  ;;  %s848_s0 = inlined_call_operand.hbm [shape: f32[2,4,128], index: 0, kind: input, shape index: {}]   ;;  %s849_s1 = inlined_call_operand.hbm [shape: f32[4,4], index: 1, kind: input, shape index: {}]   ;;  %s850_s2 = inlined_call_operand.vmem [shape: f32[1,4], index: 2, kind: input, shape index: {}]   ;;  %s851_s3 = inlined_call_operand.hbm [shape: f32[2,1,4], index: 3, kind: output, shape index: {}]  }
   0x1   :  { %10 = vsyncpa [#allocation4 + $0x1], 0 }
   0x2   :  { %11 = vsyncpa [#allocation7], 0 }
   0x3   :  { %12 = vsyncpa [#allocation5], 0 }
   0x4   :  { %14 = vsyncpa [#allocation5 + $0x1], 0  ;;  %s625_s12 = smov 0   ;;  %s627_s13 = smov 0  }
   0x5   :  { %s629_s14 = smov 0   ;;  %s631_s15 = smov 0  }
   0x6   :  { %s633_s16 = smov 0   ;;  %s635_s17 = smov 0  }
   0x7 LB: > { %s361_s18 = sadd.s32 4294967295, %s598_s17   ;;  %s362_s19 = sadd.s32 4294967294, %s598_s17   ;;  %s598_s17 = sphi %s635_s17, %s20_s17   ;;  %s594_s16 = sphi %s633_s16, %s876_s16   ;;  %s590_s15 = sphi %s631_s15, %s875_s15   ;;  %s586_s14 = sphi %s629_s14, %s874_s14   ;;  %s582_s13 = sphi %s627_s13, %s873_s13   ;;  %s578_s12 = sphi %s625_s12, %s872_s12  }
   0x8   : > { %p54_p0 = scmp.ne.s32.totalorder %s582_s13, %s578_s12  ;;  %p659_p1 = scmp.eq.s32.totalorder %s361_s18, 0 }
   0x9   : > { %p663_p2 = scmp.eq.s32.totalorder %s361_s18, 1  ;;  %p126_p3 = scmp.eq.s32.totalorder %s362_s19, 1 }
   0xa   : > { %s856_s20 = scalar_select %p659_p1, 1, 0 }
   0xb   : > { %s857_s21 = scalar_select %p663_p2, 1, 0 }
   0xc   : > { %p669_p4 = por %p659_p1, %p54_p0  ;;  %p363_p5 = scmp.ge.s32.totalorder %s598_s17, 1 }
   0xd   : > { %p674_p6 = por %p126_p3, %p54_p0  ;;  %p133_p7 = scmp.lt.s32.totalorder %s598_s17, 3 }
   0xe   : > { %s858_s22 = scalar_select %p669_p4, 1, 0 }
   0xf   : > { %s859_s23 = scalar_select %p674_p6, 1, 0 }
  0x10   : > { %p679_p8 = pnand %p363_p5, %p133_p7  ;;  %s600_s25 = smov [#allocation6]  }
  0x11   : > { %s146_s26 = sshll.u32 %s600_s25, 4  ;;  %s32_s28 = sadd.s32 1, %s594_s16  ;;  %s147_s26 = int_to_ptr.vmem [resolvable:$true] %s146_s26 }
  0x12   : > { %s860_s24 = scalar_select %p679_p8, 1, 0 }
  0x13   : > { %p382_p10 = pneg %p679_p8  ;;  %s41_s29 = sadd.s32 1, %s586_s14 }
  0x14   : > { %p694_p12 = scmp.ge.s32.totalorder %s32_s28, 2  ;;  %s454_s6 = scalar_lea.hbm %s849_s1, 64 }
  0x15   : > { %p688_p11 = pnand %p382_p10, %p659_p1  ;;  %p455_p13 = scmp.ne.s32.totalorder %s849_s1, %s454_s6 }
  0x16   : > { %s862_s30 = scalar_select %p694_p12, 1, 0 }
  0x17   : > { %p456_p0 = pneg %p688_p11  ;;  %p461_p7 = scmp.lt.u32.totalorder %s454_s6, %s849_s1 }
  0x19   : > { %p457_p3 = pnand %p456_p0, %p455_p13 }
  0x1b   : > { %p458_p5 = pneg %p457_p3 }
  0x1d   : > { %p463_p10 = pnand %p461_p7, %p458_p5 }
  0x1f   : > { %466 = shalt.err (!%p463_p10)
}
  0x20   : > { %s467_s11 = scalar_lea.vmem %s147_s26, 64  ;;  %p475_p4 = scmp.lt.s32.totalorder %s147_s26, %s147_s26 }
  0x21   : > { %p468_p9 = scmp.ne.s32.totalorder %s147_s26, %s467_s11  ;;  %p476_p8 = scmp.lt.s32.totalorder %s467_s11, %s467_s11 }
  0x23   : > { %p470_p6 = pnand %p468_p9, %p456_p0  ;;  %p477_p2 = por %p476_p8, %p475_p4 }
  0x25   : > { %p471_p1 = pneg %p470_p6 }
  0x27   : > { %p478_p12 = pnand %p477_p2, %p471_p1 }
  0x29   : > { %481 = shalt.err (!%p478_p12)
}
  0x2a   : > { %385 = dma.hbm_to_vmem [thread:$0]  (!%p688_p11), %s849_s1, 64, %s147_s26, [#allocation7]  }
  0x2b   : > { %p863_p4 = scmp.ne.s32.totalorder %s862_s30, 0  ;;  %p48_p1 = scmp.ne.s32.totalorder %s586_s14, %s582_s13 }
  0x2c   : > { %p49_p2 = scmp.eq.s32.totalorder %s598_s17, 0  ;;  %p395_p6 = scmp.lt.s32.totalorder %s598_s17, 2 }
  0x2d   : > { %s878_s28 = smov (%p863_p4, %s32_s28), 0  ;;  %p864_p12 = scmp.ne.s32.totalorder %s857_s21, 0 }
  0x2e   : > { %s36_s25 = ssub.s32 %s594_s16, %s878_s28  ;;  %p50_p9 = por %p49_p2, %p48_p1 }
  0x2f   : > { %p39_p8 = scmp.eq.s32.totalorder %s36_s25, 0  ;;  %p726_p13 = por %p864_p12, %p48_p1 }
  0x30   : > { %s160_s4 = sand.u32 1, %s586_s14   ;;  %s367_s30 = sshll.u32 %s594_s16, 6 }
  0x31   : > { %s734_s5 = scalar_select %p39_p8, %s586_s14, %s41_s29  }
  0x32   : > { %s366_s26 = sshll.u32 %s160_s4, 2  ;;  %s740_s8 = scalar_lea.hbm %s848_s0, %s367_s30 }
  0x33   : > { %s164_s21 = scalar_lea.vmem [#allocation3], %s366_s26  ;;  %p744_p11 = pnand %p395_p6, %p50_p9 }
  0x34   : > { %s172_s9 = sshll.u32 %s164_s21, 4  ;;  %s161_s29 = scalar_lea.sflag [#allocation4], %s160_s4  ;;  %s742_s9 = int_to_ptr.vmem [resolvable:$true] %s172_s9 }
  0x35   : > { %s482_s11 = scalar_lea.hbm %s740_s8, 64  ;;  %p484_p3 = pneg %p744_p11 }
  0x36   : > { %p483_p0 = scmp.ne.s32.totalorder %s740_s8, %s482_s11  ;;  %s487_s25 = scalar_lea.hbm %s848_s0, 128 }
  0x37   : > { %p488_p10 = scmp.lt.u32.totalorder %s740_s8, %s848_s0  ;;  %p489_p4 = scmp.lt.u32.totalorder %s487_s25, %s482_s11 }
  0x38   : > { %p485_p5 = pnand %p484_p3, %p483_p0  ;;  %p491_p2 = scmp.lt.u32.totalorder %s482_s11, %s740_s8 }
  0x39   : > { %p490_p1 = por %p489_p4, %p488_p10 }
  0x3a   : > { %p486_p7 = pneg %p485_p5 }
  0x3b   : > { %p492_p6 = por %p491_p2, %p490_p1 }
  0x3d   : > { %p493_p8 = pnand %p492_p6, %p486_p7 }
  0x3f   : > { %496 = shalt.err (!%p493_p8)
}
  0x40   : > { %s497_s4 = scalar_lea.vmem %s742_s9, 64  ;;  %s601_s6 = smov [#allocation3]  }
  0x41   : > { %p498_p9 = scmp.ne.s32.totalorder %s742_s9, %s497_s4  ;;  %s502_s7 = sshll.u32 %s601_s6, 4  ;;  %s503_s7 = int_to_ptr.vmem [resolvable:$false] %s502_s7 }
  0x42   : > { %s504_s21 = scalar_lea.vmem %s503_s7, 128  ;;  %p505_p5 = scmp.lt.s32.totalorder %s742_s9, %s503_s7 }
  0x43   : > { %p500_p12 = pnand %p498_p9, %p484_p3  ;;  %p506_p10 = scmp.lt.s32.totalorder %s504_s21, %s497_s4 }
  0x45   : > { %p501_p0 = pneg %p500_p12  ;;  %p507_p4 = por %p506_p10, %p505_p5 }
  0x47   : > { %p508_p1 = pnand %p507_p4, %p501_p0 }
  0x49   : > { %511 = shalt.err (!%p508_p1)
}
  0x4a   : > { %389 = dma.hbm_to_vmem [thread:$0]  (!%p744_p11), %s740_s8, 64, %s742_s9, %s161_s29  }
  0x4b   : > { %p867_p7 = scmp.ne.s32.totalorder %s860_s24, 0 }
  0x4c   : > { %s776_s11 = sand.u32 (!%p867_p7), 1, %s582_s13   ;;  %p868_p3 = scmp.ne.s32.totalorder (!%p867_p7), %s858_s22, 0 }
  0x4d   : > { %181 = sbr.rel (%p867_p7) target bundleno = 718 (0x2ce), region = 32  ;;  %s369_s18 = sshll.u32 (!%p867_p7), %s776_s11, 2 }
  0x4e   : > { %s184_s19 = scalar_lea.sflag (!%p867_p7), [#allocation4], %s776_s11  ;;  %s187_s25 = scalar_lea.vmem (!%p867_p7), [#allocation3], %s369_s18 }
  0x54   : > { %565 = dma.done.wait (%p868_p3), %s184_s19, 64  }
  0x55   : > { %567 = vsyncadd (%p868_p3), %s184_s19, 4294967232  ;;  %p869_p2 = scmp.ne.s32.totalorder %s856_s20, 0 }
  0x57   : > { %569 = dma.done.wait (%p869_p2), [#allocation7], 64  }
  0x58   : > { %571 = vsyncadd (%p869_p2), [#allocation7], 4294967232  ;;  %vm217_vm0 = vcmask 3072   ;;  %v602_v0 = vmov 0.0   ;;  %vm221_vm1 = vcmask 1043456   ;;  %v603_v3 = vmov 0  }
  0x59   : > { %218 = vst.msk [vmem:[#allocation2] sm:$0xf] %vm217_vm0, %v602_v0  ;;  %v219_v1 = vld [vmem:[%s187_s25] sm:$0xf]  ;;  %449 = vset.pattern.permute.xlu0 %v603_v3  ;;  %v233_v9 = vld [vmem:[#allocation6] sm:$0xf] }
  0x5a   : > { %v222_v2 = vsel %vm221_vm1, %v219_v1, 0.0  ;;  %vm240_vm2 = vcmask 27648   ;;  %v248_v18 = vld [vmem:[%s850_s2] sm:$0x1]  ;;  %vm250_vm3 = vcmask 24576   ;;  %s371_s24 = sshll.u32 %s590_s15, 4 }
  0x5b   : > { %223 = vadd.xlane.f32.xlu0 %v222_v2  ;;  %s212_s8 = scalar_lea.vmem [#allocation8], %s776_s11  ;;  %s798_s26 = scalar_lea.hbm %s851_s3, %s371_s24 }
  0x5c   : > { %s276_s9 = sshll.u32 %s212_s8, 4  ;;  %s264_s30 = scalar_lea.sflag [#allocation5], %s776_s11  ;;  %s800_s9 = int_to_ptr.vmem [resolvable:$true] %s276_s9 }
  0x5d   : > { %s512_s4 = scalar_lea.vmem %s800_s9, 16  ;;  %s604_s15 = smov [#allocation8]  }
  0x5e   : > { %p513_p11 = scmp.ne.s32.totalorder %s800_s9, %s512_s4  ;;  %s516_s6 = sshll.u32 %s604_s15, 4  ;;  %s517_s6 = int_to_ptr.vmem [resolvable:$false] %s516_s6 }
  0x5f   : > { %s518_s7 = scalar_lea.vmem %s517_s6, 32  ;;  %p519_p9 = scmp.lt.s32.totalorder %s800_s9, %s517_s6 }
  0x60   : > { %v220_v4 = vld [vmem:[#allocation2] sm:$0xf]  ;;  %p514_p6 = pnand %p513_p11, %p726_p13  ;;  %p520_p12 = scmp.lt.s32.totalorder %s518_s7, %s512_s4 }
  0x62   : > { %p515_p8 = pneg %p514_p6  ;;  %p521_p0 = por %p520_p12, %p519_p9 }
  0x64   : > { %p522_p5 = pnand %p521_p0, %p515_p8 }
  0xe8   : > { %v224_v5 = vpop.xlane.xlu0 %223 }
  0xe9   : > { %v225_v6 = vadd.f32 %v224_v5, %v220_v4 }
  0xeb   : > { %227 = vst.msk [vmem:[#allocation2] sm:$0xf] %vm217_vm0, %v225_v6 }
  0xf2   : > { %v231_v7 = vld [vmem:[#allocation2] sm:$0xf] }
  0xf3   : > { %v232_v8 = vmul.f32 0.0625, %v231_v7 }
  0xf5   : > { %236 = vperm.xlu0 %449, %v232_v8  }
 0x174   : > { %v237_v10 = vpop.permute.xlu0 %236 }
 0x175   : > { %v239_v11 = vmul.f32 %v237_v10, %v233_v9 }
 0x177   : > { %v241_v12 = vsel %vm240_vm2, %v239_v11, 0.0 }
 0x178   : > { %v242_v13 = vrot.slane %v241_v12, 4 }
 0x17a   : > { %v243_v14 = vadd.f32 %v242_v13, %v241_v12 }
 0x17c   : > { %v244_v15 = vrot.slane %v243_v14, 2 }
 0x17e   : > { %v245_v16 = vadd.f32 %v244_v15, %v243_v14 }
 0x180   : > { %v246_v17 = vrot.slane %v245_v16, 1 }
 0x182   : > { %v247_v19 = vadd.f32 %v246_v17, %v245_v16 }
 0x184   : > { %v249_v20 = vadd.f32 %v248_v18, %v247_v19 }
 0x186   : > { %v251_v21 = vsel %vm250_vm3, %v249_v20, -inf }
 0x187   : > { %252 = vmax.xlane.f32.xlu1 %v251_v21 }
 0x214   : > { %v253_v22 = vpop.xlane.xlu1 %252 }
 0x215   : > { %v254_v23 = vsub.f32 %v249_v20, %v253_v22 }
 0x217   : > { %v255_v24 = vmul.f32 1.442695, %v254_v23 }
 0x219   : > { %450 = vpow2.f32 %v255_v24 }
 0x223   : > { %v451_v25 = vpop.eup %450 }
 0x224   : > { %v257_v26 = vsel %vm250_vm3, %v451_v25, 0.0 }
 0x225   : > { %258 = vadd.xlane.f32.xlu1 %v257_v26 }
 0x2b2   : > { %v259_v27 = vpop.xlane.xlu1 %258 }
 0x2b3   : > { %452 = vrcp.f32 %v259_v27 }
 0x2bd   : > { %v453_v28 = vpop.eup %452 }
 0x2be   : > { %v261_v29 = vmul.f32 %v453_v28, %v451_v25 }
 0x2c0   : > { %262 = vst.msk [vmem:[%s212_s8] sm:$0x1] %vm250_vm3, %v261_v29 }
 0x2c1   : > { %525 = shalt.err (!%p522_p5)
}
 0x2c2   : > { %s526_s21 = scalar_lea.hbm %s798_s26, 16  ;;  %s530_s19 = scalar_lea.hbm %s851_s3, 32 }
 0x2c3   : > { %p527_p10 = scmp.ne.s32.totalorder %s798_s26, %s526_s21  ;;  %p531_p7 = scmp.lt.u32.totalorder %s798_s26, %s851_s3 }
 0x2c4   : > { %p532_p3 = scmp.lt.u32.totalorder %s530_s19, %s526_s21  ;;  %p534_p11 = scmp.lt.u32.totalorder %s526_s21, %s798_s26 }
 0x2c5   : > { %p528_p4 = pnand %p527_p10, %p726_p13 }
 0x2c6   : > { %p533_p2 = por %p532_p3, %p531_p7 }
 0x2c7   : > { %p529_p1 = pneg %p528_p4 }
 0x2c8   : > { %p535_p6 = por %p534_p11, %p533_p2 }
 0x2ca   : > { %p536_p8 = pnand %p535_p6, %p529_p1 }
 0x2cc   : > { %539 = shalt.err (!%p536_p8)
}
 0x2cd   : > { %380 = dma.vmem_to_hbm [thread:$0]  (%p726_p13), %s800_s9, 16, %s798_s26, %s264_s30  }
 0x2ce PF: > { %s288_s22 = sand.u32 1, %s578_s12   ;;  %p870_p9 = scmp.ne.s32.totalorder %s859_s23, 0 }
 0x2cf   : > { %p871_p12 = scmp.ge.s32.totalorder %s598_s17, 2  ;;  %s289_s24 = scalar_lea.sflag [#allocation5], %s288_s22 }
 0x2d1   : > { %p391_p0 = pnand %p871_p12, %p870_p9 }
 0x2d3   : > { %573 = dma.done.wait (!%p391_p0), %s289_s24, 16  }
 0x2d4   : > { %575 = vsyncadd (!%p391_p0), %s289_s24, 4294967280  ;;  %s20_s17 = sadd.s32 1, %s598_s17   ;;  %s872_s12 = smov %s582_s13 }
 0x2d5   : > { %p17_p5 = scmp.ge.s32.totalorder %s20_s17, 4   ;;  %s873_s13 = smov %s586_s14 }
 0x2d6   : > { %s874_s14 = smov %s734_s5  ;;  %s875_s15 = smov %s594_s16 }
 0x2d7   : > { %s876_s16 = smov %s878_s28  ;;  %19 = sbr.rel (!%p17_p5) target bundleno = 7 (0x7), region = 89 }
 0x2de   :  { %293 = vsyncpa [#allocation4], 1 }
 0x2df   :  { %295 = vsyncpa [#allocation4 + $0x1], 1 }
 0x2e0   :  { %296 = vsyncpa [#allocation7], 1 }
 0x2e1   :  { %297 = vsyncpa [#allocation5], 1 }
 0x2e2   :  { %299 = vsyncpa [#allocation5 + $0x1], 1 }

</bundles_post_ra>
